<compile_context>
chip_gen: v5e
topology: v5e:2x2
jax: 0.10.0
libtpu: 0.0.40
codegen_flags: <defaults>
</compile_context>

<pallas_src>
import jax
import jax.numpy as jnp
from jax.experimental import pallas as pl
from jax.experimental.pallas import tpu as pltpu


def discriminator_kernel(x_ref, w1_ref, b1_ref, w2_ref, b2_ref, w3_ref, b3_ref,
                         o_ref):
    mxu_dtype = w1_ref.dtype

    # Small XLU transpose (T, z_dim) -> (z_dim, T), then cast f32 -> MXU dtype
    # on the VPU (hidden under the MXU).  Everything downstream is W @ act,
    # so the MXU N dim is batch_tile and the fc3 output is lane-dense.
    xT = x_ref[...].T.astype(mxu_dtype)                       # (z_dim, T)

    # fc1 + ReLU   (MXU, f32 accumulate; f32 VPU epilogue)
    h1 = jnp.dot(w1_ref[...], xT, preferred_element_type=jnp.float32)   # (h, T)
    h1 = jnp.maximum(h1 + b1_ref[...], 0.0)

    # fc2 + ReLU
    h2 = jnp.dot(w2_ref[...], h1.astype(mxu_dtype),
                 preferred_element_type=jnp.float32)                    # (h, T)
    h2 = jnp.maximum(h2 + b2_ref[...], 0.0)

    # fc3 + Sigmoid -> lane-dense (1, T) row
    logits = jnp.dot(w3_ref[...], h2.astype(mxu_dtype),
                     preferred_element_type=jnp.float32)                # (1, T)
    logits = logits + b3_ref[0]                                         # SMEM scalar
    o_ref[...] = jax.nn.sigmoid(logits).astype(o_ref.dtype)


def _round_up(x, m):
    return ((x + m - 1) // m) * m


def discriminator_forward(x, params, *, max_batch_tile=4096,
                          mxu_dtype=jnp.bfloat16):
    """x: [B, z_dim] float32 -> [B, 1] float32 (sigmoid probability)."""
    w1, b1, w2, b2, w3, b3 = params
    B, z_dim = x.shape
    h_dim = w1.shape[0]

    # --- Tile sizing ---------------------------------------------------------
    # Big tiles amortise the ~0.35 us/grid-step overhead; multiples of 256
    # fully fill the v6e/v7x MXU; >= 2 tiles (when B allows) keeps the
    # "parallel" axis split across both v7x TensorCores; even spreading keeps
    # ragged-batch padding < n_tiles * 256 rows.
    B256 = _round_up(max(B, 1), 256)
    n_tiles = max(1, pl.cdiv(B256, max_batch_tile))
    if n_tiles == 1 and B256 >= 512:
        n_tiles = 2
    batch_tile = _round_up(pl.cdiv(B, n_tiles), 256)
    Bp = n_tiles * batch_tile
    if Bp != B:
        x = jnp.pad(x, ((0, Bp - B), (0, 0)))

    # Only the (tiny) weight matrices are cast in the wrapper; x is streamed
    # in f32 and cast inside the kernel.
    w1m = w1.astype(mxu_dtype)
    w2m = w2.astype(mxu_dtype)
    w3m = w3.astype(mxu_dtype)

    # Constant index_map -> block stays resident in VMEM across the grid.
    full = lambda shape: pl.BlockSpec(shape, lambda i: (0, 0))

    out_row = pl.pallas_call(
        discriminator_kernel,
        out_shape=jax.ShapeDtypeStruct((1, Bp), jnp.float32),
        grid_spec=pltpu.PrefetchScalarGridSpec(
            num_scalar_prefetch=0,
            grid=(n_tiles,),
            in_specs=[
                # Streamed x tile (f32; cast to MXU dtype in-kernel).
                pl.BlockSpec((batch_tile, z_dim), lambda i: (i, 0)),
                full((h_dim, z_dim)),   # w1  (PyTorch (out, in) layout)
                full((h_dim, 1)),       # b1  (column, broadcasts over lanes)
                full((h_dim, h_dim)),   # w2
                full((h_dim, 1)),       # b2
                full((1, h_dim)),       # w3  (out=1, in=h_dim)
                pl.BlockSpec(memory_space=pltpu.MemorySpace.SMEM),  # b3 scalar
            ],
            # Lane-dense output: each grid step writes batch_tile (>=256) lanes.
            out_specs=pl.BlockSpec((1, batch_tile), lambda i: (0, i)),
        ),
        compiler_params=pltpu.CompilerParams(
            dimension_semantics=("parallel",),
            vmem_limit_bytes=32 * 1024 * 1024,
        ),
    )(x, w1m, b1, w2m, b2, w3m, b3)

    return out_row.reshape(-1)[:B].reshape(B, 1)


def init_discriminator_params(key, z_dim, h_dim):
    """Deterministic init matching nn.Linear's U(-1/sqrt(fan_in), 1/sqrt(fan_in)).

    Weights keep the PyTorch (out, in) layout (the kernel runs feature-major,
    W @ act); biases b1/b2 are stored as (h_dim, 1) columns, b3 as a scalar.
    """
    def linear(key, fan_in, fan_out):
        kw, kb = jax.random.split(key)
        bound = 1.0 / jnp.sqrt(fan_in)
        w = jax.random.uniform(kw, (fan_out, fan_in), jnp.float32, -bound, bound)
        b = jax.random.uniform(kb, (fan_out, 1), jnp.float32, -bound, bound)
        return w, b

    k1, k2, k3 = jax.random.split(key, 3)
    w1, b1 = linear(k1, z_dim, h_dim)
    w2, b2 = linear(k2, h_dim, h_dim)

    kw3, kb3 = jax.random.split(k3)
    bound3 = 1.0 / jnp.sqrt(h_dim)
    w3 = jax.random.uniform(kw3, (1, h_dim), jnp.float32, -bound3, bound3)
    b3 = jax.random.uniform(kb3, (1,), jnp.float32, -bound3, bound3)
    return (w1, b1, w2, b2, w3, b3)


def discriminator_reference(x, params):
    w1, b1, w2, b2, w3, b3 = params
    h1 = jnp.maximum(x @ w1.T + b1.T, 0.0)
    h2 = jnp.maximum(h1 @ w2.T + b2.T, 0.0)
    return jax.nn.sigmoid(h2 @ w3.T + b3)


if __name__ == "__main__":
    B, z_dim, h_dim = 8, 32, 128

    key = jax.random.PRNGKey(0)
    kx, kp = jax.random.split(key)
    x = jax.random.normal(kx, (B, z_dim), jnp.float32)
    params = init_discriminator_params(kp, z_dim, h_dim)

    ref = discriminator_reference(x, params)

    # Exact-precision path (f32 MXU operands): tight check.
    out_f32 = jax.block_until_ready(
        discriminator_forward(x, params, mxu_dtype=jnp.float32))
    assert out_f32.shape == (B, 1)
    assert jnp.allclose(out_f32, ref, atol=1e-5, rtol=1e-5), "f32 mismatch"

    # Default fast path (bf16 MXU operands, f32 accumulate / epilogue).
    out_bf16 = jax.block_until_ready(discriminator_forward(x, params))
    assert out_bf16.shape == (B, 1)
    assert jnp.allclose(out_bf16, ref, atol=1e-2, rtol=1e-2), "bf16 mismatch"

    print("KERNEL_OK")
</pallas_src>

<mosaic_0001>
module attributes {stable_mosaic.version = 11 : i64} {
  func.func @discriminator_kernel(%arg0: i32, %arg1: memref<256x32xf32, #tpu.memory_space<vmem>>, %arg2: memref<128x32xf32, #tpu.memory_space<vmem>>, %arg3: memref<128x1xf32, #tpu.memory_space<vmem>>, %arg4: memref<128x128xf32, #tpu.memory_space<vmem>>, %arg5: memref<128x1xf32, #tpu.memory_space<vmem>>, %arg6: memref<1x128xf32, #tpu.memory_space<vmem>>, %arg7: memref<1xf32, #tpu.memory_space<smem>>, %arg8: memref<1x256xf32, #tpu.memory_space<vmem>>) attributes {dimension_semantics = [#tpu.dimension_semantics<parallel>], iteration_bounds = array<i64: 1>, scalar_prefetch = 0 : i64, scratch_operands = 0 : i64, tpu.core_type = #tpu.core_type<tc>, window_params = [{transform_indices = @transform_0, window_bounds = array<i64: 256, 32>}, {pipeline_mode = #tpu.pipeline_mode<synchronous>, transform_indices = @transform_1, window_bounds = array<i64: 128, 32>}, {pipeline_mode = #tpu.pipeline_mode<synchronous>, transform_indices = @transform_2, window_bounds = array<i64: 128, 1>}, {pipeline_mode = #tpu.pipeline_mode<synchronous>, transform_indices = @transform_3, window_bounds = array<i64: 128, 128>}, {pipeline_mode = #tpu.pipeline_mode<synchronous>, transform_indices = @transform_4, window_bounds = array<i64: 128, 1>}, {pipeline_mode = #tpu.pipeline_mode<synchronous>, transform_indices = @transform_5, window_bounds = array<i64: 1, 128>}, {transform_indices = @transform_6, window_bounds = array<i64: 1>}, {transform_indices = @transform_7, window_bounds = array<i64: 1, 256>}]} {
    %c0 = arith.constant 0 : index
    %c0_0 = arith.constant 0 : index
    %0 = vector.load %arg1[%c0, %c0_0] : memref<256x32xf32, #tpu.memory_space<vmem>>, vector<256x32xf32>
    %1 = tpu.transpose %0, [1, 0] : vector<256x32xf32> -> vector<32x256xf32>
    %c0_1 = arith.constant 0 : index
    %c0_2 = arith.constant 0 : index
    %2 = vector.load %arg2[%c0_1, %c0_2] : memref<128x32xf32, #tpu.memory_space<vmem>>, vector<128x32xf32>
    %cst = arith.constant dense<0.000000e+00> : vector<128x256xf32>
    %3 = tpu.matmul %2, %1, %cst {dimension_numbers = #tpu.dot_dimension_numbers<[1], [0], [0], [1], [0, 0, 1, 1], [], []>} : vector<128x32xf32>, vector<32x256xf32>, vector<128x256xf32> -> vector<128x256xf32>
    %c0_3 = arith.constant 0 : index
    %c0_4 = arith.constant 0 : index
    %4 = vector.load %arg3[%c0_3, %c0_4] : memref<128x1xf32, #tpu.memory_space<vmem>>, vector<128x1xf32>
    %5 = vector.broadcast %4 : vector<128x1xf32> to vector<128x256xf32>
    %6 = arith.addf %3, %5 : vector<128x256xf32>
    %cst_5 = arith.constant 0.000000e+00 : f32
    %7 = vector.broadcast %cst_5 : f32 to vector<128x256xf32>
    %8 = arith.maximumf %6, %7 : vector<128x256xf32>
    %c0_6 = arith.constant 0 : index
    %c0_7 = arith.constant 0 : index
    %9 = vector.load %arg4[%c0_6, %c0_7] : memref<128x128xf32, #tpu.memory_space<vmem>>, vector<128x128xf32>
    %cst_8 = arith.constant dense<0.000000e+00> : vector<128x256xf32>
    %10 = tpu.matmul %9, %8, %cst_8 {dimension_numbers = #tpu.dot_dimension_numbers<[1], [0], [0], [1], [0, 0, 1, 1], [], []>} : vector<128x128xf32>, vector<128x256xf32>, vector<128x256xf32> -> vector<128x256xf32>
    %c0_9 = arith.constant 0 : index
    %c0_10 = arith.constant 0 : index
    %11 = vector.load %arg5[%c0_9, %c0_10] : memref<128x1xf32, #tpu.memory_space<vmem>>, vector<128x1xf32>
    %12 = vector.broadcast %11 : vector<128x1xf32> to vector<128x256xf32>
    %13 = arith.addf %10, %12 : vector<128x256xf32>
    %cst_11 = arith.constant 0.000000e+00 : f32
    %14 = vector.broadcast %cst_11 : f32 to vector<128x256xf32>
    %15 = arith.maximumf %13, %14 : vector<128x256xf32>
    %c0_12 = arith.constant 0 : index
    %c0_13 = arith.constant 0 : index
    %16 = vector.load %arg6[%c0_12, %c0_13] : memref<1x128xf32, #tpu.memory_space<vmem>>, vector<1x128xf32>
    %cst_14 = arith.constant dense<0.000000e+00> : vector<1x256xf32>
    %17 = tpu.matmul %16, %15, %cst_14 {dimension_numbers = #tpu.dot_dimension_numbers<[1], [0], [0], [1], [0, 0, 1, 1], [], []>} : vector<1x128xf32>, vector<128x256xf32>, vector<1x256xf32> -> vector<1x256xf32>
    %c0_15 = arith.constant 0 : index
    %18 = memref.load %arg7[%c0_15] : memref<1xf32, #tpu.memory_space<smem>>
    %19 = vector.broadcast %18 : f32 to vector<1x256xf32>
    %20 = arith.addf %17, %19 : vector<1x256xf32>
    %21 = arith.negf %20 : vector<1x256xf32>
    %22 = math.exp %21 : vector<1x256xf32>
    %cst_16 = arith.constant 1.000000e+00 : f32
    %23 = vector.broadcast %cst_16 : f32 to vector<1x256xf32>
    %24 = arith.addf %23, %22 : vector<1x256xf32>
    %25 = arith.divf %23, %24 : vector<1x256xf32>
    %c0_17 = arith.constant 0 : index
    %c0_18 = arith.constant 0 : index
    %26 = vector.load %arg8[%c0_17, %c0_18] : memref<1x256xf32, #tpu.memory_space<vmem>>, vector<1x256xf32>
    tpu.vector_store %arg8[%c0_17, %c0_18], %25 {strides = array<i32>} : memref<1x256xf32, #tpu.memory_space<vmem>>, vector<1x256xf32>,
    return
  }
  func.func @transform_0(%arg0: i32) -> (i32, i32) {
    %c0_i32 = arith.constant 0 : i32
    %c0_i32_0 = arith.constant 0 : i32
    return %arg0, %c0_i32 : i32, i32
  }
  func.func @transform_1(%arg0: i32) -> (i32, i32) {
    %c0_i32 = arith.constant 0 : i32
    %c0_i32_0 = arith.constant 0 : i32
    %c0_i32_1 = arith.constant 0 : i32
    return %c0_i32, %c0_i32_0 : i32, i32
  }
  func.func @transform_2(%arg0: i32) -> (i32, i32) {
    %c0_i32 = arith.constant 0 : i32
    %c0_i32_0 = arith.constant 0 : i32
    %c0_i32_1 = arith.constant 0 : i32
    return %c0_i32, %c0_i32_0 : i32, i32
  }
  func.func @transform_3(%arg0: i32) -> (i32, i32) {
    %c0_i32 = arith.constant 0 : i32
    %c0_i32_0 = arith.constant 0 : i32
    %c0_i32_1 = arith.constant 0 : i32
    return %c0_i32, %c0_i32_0 : i32, i32
  }
  func.func @transform_4(%arg0: i32) -> (i32, i32) {
    %c0_i32 = arith.constant 0 : i32
    %c0_i32_0 = arith.constant 0 : i32
    %c0_i32_1 = arith.constant 0 : i32
    return %c0_i32, %c0_i32_0 : i32, i32
  }
  func.func @transform_5(%arg0: i32) -> (i32, i32) {
    %c0_i32 = arith.constant 0 : i32
    %c0_i32_0 = arith.constant 0 : i32
    %c0_i32_1 = arith.constant 0 : i32
    return %c0_i32, %c0_i32_0 : i32, i32
  }
  func.func @transform_6(%arg0: i32) -> i32 {
    %c0_i32 = arith.constant 0 : i32
    %c0_i32_0 = arith.constant 0 : i32
    return %c0_i32 : i32
  }
  func.func @transform_7(%arg0: i32) -> (i32, i32) {
    %c0_i32 = arith.constant 0 : i32
    %c0_i32_0 = arith.constant 0 : i32
    return %c0_i32, %arg0 : i32, i32
  }
}

</mosaic_0001>

<bundles_post_ra>
// kernel: tpu_custom_call.1
= control target key start
LH: loop header
LB: loop body
LE: loop exit
PB: predicated region body
PF: predicated region fallthrough
CT: control target
= control target key end

     0   :  { %vm172_vm0 = vcmask 261120   ;;  %v966_v4 = vmov 0   ;;  %s1465_s0 = inlined_call_operand.vmem [shape: f32[256,32], index: 0, kind: input, shape index: {}]   ;;  %s1466_s1 = inlined_call_operand.vmem [shape: f32[128,32], index: 1, kind: input, shape index: {}]   ;;  %s1467_s2 = inlined_call_operand.vmem [shape: f32[128,1], index: 2, kind: input, shape index: {}]   ;;  %s1468_s3 = inlined_call_operand.vmem [shape: f32[128,128], index: 3, kind: input, shape index: {}]   ;;  %s1469_s4 = inlined_call_operand.vmem [shape: f32[128,1], index: 4, kind: input, shape index: {}]   ;;  %s1470_s5 = inlined_call_operand.vmem [shape: f32[1,128], index: 5, kind: input, shape index: {}]   ;;  %s1471_s6 = inlined_call_operand.<no memory space> [shape: f32[1], index: 6, kind: input, shape index: {}]   ;;  %s1472_s7 = inlined_call_operand.hbm [shape: f32[1,256], index: 7, kind: output, shape index: {}]  }
   0x1   :  { %v43_v0 = vld [vmem:[%s1465_s0 + $0x78] sm:$0xff]  ;;  %v42_v2 = vld [vmem:[%s1465_s0 + $0x70] sm:$0xff]  ;;  %929 = vset.pattern.permute.xlu0 %v966_v4  ;;  %930 = vset.pattern.permute.xlu1 %v966_v4  ;;  %v41_v5 = vld [vmem:[%s1465_s0 + $0x68] sm:$0xff] }
   0x2   :  { %v59_v1 = vld [vmem:[%s1465_s0 + $0xf8] sm:$0xff]  ;;  %861 = vmatpush.xpose.msk.msra.mxu0 %vm172_vm0, %v43_v0  ;;  %v58_v3 = vld [vmem:[%s1465_s0 + $0xf0] sm:$0xff]  ;;  %931 = vset.pattern.permute.xlu2 %v966_v4  ;;  %v57_v6 = vld [vmem:[%s1465_s0 + $0xe8] sm:$0xff] }
   0x3   :  { %893 = vmatpush.xpose.msk.msra.mxu1 %vm172_vm0, %v59_v1  ;;  %v91_v7 = vld [vmem:[%s1467_s2 + $0x78] sm:$0xff] }
   0x4   :  { %169 = vperm.xlu0 %929, %v91_v7  }
   0x6   :  { %862 = vmatpush.xpose.msk.msra.mxu0 %vm172_vm0, %v42_v2 }
   0x7   :  { %894 = vmatpush.xpose.msk.msra.mxu1 %vm172_vm0, %v58_v3 }
   0x8   :  { %13 = vsyncpa [#allocation4], 0  ;;  %v40_v8 = vld [vmem:[%s1465_s0 + $0x60] sm:$0xff]  ;;  %v90_v10 = vld [vmem:[%s1467_s2 + $0x70] sm:$0xff]  ;;  %s852_s25 = sshll.u32 %s1472_s7, 4  ;;  %vm837_vm8 = vcmask 1040384   ;;  %s853_s25 = int_to_ptr.hbm [resolvable:$true] %s852_s25 }
   0x9   :  { %v56_v9 = vld [vmem:[%s1465_s0 + $0xe0] sm:$0xff]  ;;  %v39_v11 = vld [vmem:[%s1465_s0 + $0x58] sm:$0xff]  ;;  %v38_v13 = vld [vmem:[%s1465_s0 + $0x50] sm:$0xff] }
   0xa   :  { %863 = vmatpush.xpose.msk.msra.mxu0 %vm172_vm0, %v41_v5  ;;  %v55_v12 = vld [vmem:[%s1465_s0 + $0xd8] sm:$0xff]  ;;  %v54_v14 = vld [vmem:[%s1465_s0 + $0xd0] sm:$0xff]  ;;  %v85_v15 = vld [vmem:[%s1467_s2 + $0x48] sm:$0xff] }
   0xb   :  { %895 = vmatpush.xpose.msk.msra.mxu1 %vm172_vm0, %v57_v6  ;;  %v37_v16 = vld [vmem:[%s1465_s0 + $0x48] sm:$0xff]  ;;  %v36_v19 = vld [vmem:[%s1465_s0 + $0x40] sm:$0xff]  ;;  %v82_v21 = vld [vmem:[%s1467_s2 + $0x30] sm:$0xff] }
   0xc   :  { %164 = vperm.xlu0 %929, %v90_v10   ;;  %v53_v17 = vld [vmem:[%s1465_s0 + $0xc8] sm:$0xff]  ;;  %v52_v20 = vld [vmem:[%s1465_s0 + $0xc0] sm:$0xff]  ;;  %v35_v22 = vld [vmem:[%s1465_s0 + $0x38] sm:$0xff] }
   0xd   :  { %v89_v18 = vld [vmem:[%s1467_s2 + $0x68] sm:$0xff]  ;;  %v51_v23 = vld [vmem:[%s1465_s0 + $0xb8] sm:$0xff]  ;;  %v88_v24 = vld [vmem:[%s1467_s2 + $0x60] sm:$0xff] }
   0xe   :  { %864 = vmatpush.xpose.msk.msra.mxu0 %vm172_vm0, %v40_v8  ;;  %159 = vperm.xlu1 %930, %v89_v18   ;;  %v34_v25 = vld [vmem:[%s1465_s0 + $0x30] sm:$0xff]  ;;  %v79_v27 = vld [vmem:[%s1467_s2 + $0x18] sm:$0xff]  ;;  %v33_v28 = vld [vmem:[%s1465_s0 + $0x28] sm:$0xff] }
   0xf   :  { %896 = vmatpush.xpose.msk.msra.mxu1 %vm172_vm0, %v56_v9  ;;  %v50_v26 = vld [vmem:[%s1465_s0 + $0xb0] sm:$0xff]  ;;  %v49_v29 = vld [vmem:[%s1465_s0 + $0xa8] sm:$0xff]  ;;  %v87_v30 = vld [vmem:[%s1467_s2 + $0x58] sm:$0xff] }
  0x10   :  { %v84_v31 = vld [vmem:[%s1467_s2 + $0x40] sm:$0xff]  ;;  %149 = vperm.xlu2 %931, %v87_v30   ;;  %v31_v35 = vld [vmem:[%s1465_s0 + $0x18] sm:$0xff]  ;;  %v86_v37 = vld [vmem:[%s1467_s2 + $0x50] sm:$0xff] }
  0x11   :  { %v32_v32 = vld [vmem:[%s1465_s0 + $0x20] sm:$0xff]  ;;  %v47_v36 = vld [vmem:[%s1465_s0 + $0x98] sm:$0xff]  ;;  %v81_v38 = vld [vmem:[%s1467_s2 + $0x28] sm:$0xff] }
  0x12   :  { %865 = vmatpush.xpose.msk.msra.mxu0 %vm172_vm0, %v39_v11  ;;  %v48_v33 = vld [vmem:[%s1465_s0 + $0xa0] sm:$0xff]  ;;  %v30_v39 = vld [vmem:[%s1465_s0 + $0x10] sm:$0xff]  ;;  %v29_v41 = vld [vmem:[%s1465_s0 + $0x8] sm:$0xff] }
  0x13   :  { %897 = vmatpush.xpose.msk.msra.mxu1 %vm172_vm0, %v55_v12  ;;  %v76_v34 = vld [vmem:[%s1467_s2] sm:$0xff]  ;;  %v46_v40 = vld [vmem:[%s1465_s0 + $0x90] sm:$0xff]  ;;  %v45_v42 = vld [vmem:[%s1465_s0 + $0x88] sm:$0xff] }
  0x14   :  { %139 = vperm.xlu0 %929, %v85_v15   ;;  %v83_v43 = vld [vmem:[%s1467_s2 + $0x38] sm:$0xff]  ;;  %v78_v44 = vld [vmem:[%s1467_s2 + $0x10] sm:$0xff]  ;;  %v28_v45 = vld [vmem:[%s1465_s0] sm:$0xff] }
  0x15   :  { %v44_v46 = vld [vmem:[%s1465_s0 + $0x80] sm:$0xff]  ;;  %v61_v49 = vld [vmem:[%s1466_s1 + $0x8] sm:$0xff]  ;;  %v62_v51 = vld [vmem:[%s1466_s1 + $0x10] sm:$0xff] }
  0x16   :  { %866 = vmatpush.xpose.msk.msra.mxu0 %vm172_vm0, %v38_v13  ;;  %154 = vperm.xlu1 %930, %v88_v24   ;;  %v60_v47 = vld [vmem:[%s1466_s1] sm:$0xff]  ;;  %v77_v50 = vld [vmem:[%s1467_s2 + $0x8] sm:$0xff]  ;;  %v63_v52 = vld [vmem:[%s1466_s1 + $0x18] sm:$0xff] }
  0x17   :  { %898 = vmatpush.xpose.msk.msra.mxu1 %vm172_vm0, %v54_v14  ;;  %v80_v48 = vld [vmem:[%s1467_s2 + $0x20] sm:$0xff]  ;;  %v65_v54 = vld [vmem:[%s1466_s1 + $0x28] sm:$0xff]  ;;  %v66_v55 = vld [vmem:[%s1466_s1 + $0x30] sm:$0xff] }
  0x18   :  { %144 = vperm.xlu2 %931, %v86_v37   ;;  %v64_v53 = vld [vmem:[%s1466_s1 + $0x20] sm:$0xff]  ;;  %v510_v56 = vld [vmem:[%s1469_s4 + $0x78] sm:$0xff]  ;;  %v508_v58 = vld [vmem:[%s1469_s4 + $0x68] sm:$0xff] }
  0x19   :  { %v67_v57 = vld [vmem:[%s1466_s1 + $0x38] sm:$0xff]  ;;  %v507_v59 = vld [vmem:[%s1469_s4 + $0x60] sm:$0xff]  ;;  %v505_v61 = vld [vmem:[%s1469_s4 + $0x50] sm:$0xff] }
  0x1a   :  { %867 = vmatpush.xpose.msk.msra.mxu0 %vm172_vm0, %v37_v16  ;;  %v68_v60 = vld [vmem:[%s1466_s1 + $0x40] sm:$0xff]  ;;  %v504_v62 = vld [vmem:[%s1469_s4 + $0x48] sm:$0xff]  ;;  %v502_v0 = vld [vmem:[%s1469_s4 + $0x38] sm:$0xff] }
  0x1b   :  { %899 = vmatpush.xpose.msk.msra.mxu1 %vm172_vm0, %v53_v17  ;;  %v69_v63 = vld [vmem:[%s1466_s1 + $0x48] sm:$0xff]  ;;  %v501_v1 = vld [vmem:[%s1469_s4 + $0x30] sm:$0xff]  ;;  %v499_v3 = vld [vmem:[%s1469_s4 + $0x20] sm:$0xff] }
  0x1c   :  { %124 = vperm.xlu0 %929, %v82_v21   ;;  %v70_v2 = vld [vmem:[%s1466_s1 + $0x50] sm:$0xff]  ;;  %v498_v4 = vld [vmem:[%s1469_s4 + $0x18] sm:$0xff]  ;;  %v496_v7 = vld [vmem:[%s1469_s4 + $0x8] sm:$0xff] }
  0x1d   :  { %v509_v5 = vld [vmem:[%s1469_s4 + $0x70] sm:$0xff]  ;;  %v71_v6 = vld [vmem:[%s1466_s1 + $0x58] sm:$0xff]  ;;  %v495_v8 = vld [vmem:[%s1469_s4] sm:$0xff] }
  0x1e   :  { %868 = vmatpush.xpose.msk.msra.mxu0 %vm172_vm0, %v36_v19  ;;  %134 = vperm.xlu1 %930, %v84_v31   ;;  %v72_v9 = vld [vmem:[%s1466_s1 + $0x60] sm:$0xff]  ;;  %v506_v10 = vld [vmem:[%s1469_s4 + $0x58] sm:$0xff]  ;;  %v73_v11 = vld [vmem:[%s1466_s1 + $0x68] sm:$0xff] }
  0x1f   :  { %900 = vmatpush.xpose.msk.msra.mxu1 %vm172_vm0, %v52_v20  ;;  %v503_v12 = vld [vmem:[%s1469_s4 + $0x40] sm:$0xff]  ;;  %v74_v13 = vld [vmem:[%s1466_s1 + $0x70] sm:$0xff]  ;;  %v500_v14 = vld [vmem:[%s1469_s4 + $0x28] sm:$0xff] }
  0x20   :  { %129 = vperm.xlu2 %931, %v83_v43   ;;  %v75_v15 = vld [vmem:[%s1466_s1 + $0x78] sm:$0xff]  ;;  %v497_v16 = vld [vmem:[%s1469_s4 + $0x10] sm:$0xff] }
  0x22   :  { %869 = vmatpush.xpose.msk.msra.mxu0 %vm172_vm0, %v35_v22 }
  0x23   :  { %901 = vmatpush.xpose.msk.msra.mxu1 %vm172_vm0, %v51_v23 }
  0x24   :  { %109 = vperm.xlu0 %929, %v79_v27  }
  0x26   :  { %870 = vmatpush.xpose.msk.msra.mxu0 %vm172_vm0, %v34_v25  ;;  %119 = vperm.xlu1 %930, %v81_v38  }
  0x27   :  { %902 = vmatpush.xpose.msk.msra.mxu1 %vm172_vm0, %v50_v26 }
  0x28   :  { %114 = vperm.xlu2 %931, %v80_v48  }
  0x2a   :  { %871 = vmatpush.xpose.msk.msra.mxu0 %vm172_vm0, %v33_v28 }
  0x2b   :  { %903 = vmatpush.xpose.msk.msra.mxu1 %vm172_vm0, %v49_v29 }
  0x2c   :  { %94 = vperm.xlu0 %929, %v76_v34  }
  0x2e   :  { %872 = vmatpush.xpose.msk.msra.mxu0 %vm172_vm0, %v32_v32  ;;  %104 = vperm.xlu1 %930, %v78_v44  }
  0x2f   :  { %904 = vmatpush.xpose.msk.msra.mxu1 %vm172_vm0, %v48_v33 }
  0x30   :  { %99 = vperm.xlu2 %931, %v77_v50  }
  0x32   :  { %873 = vmatpush.xpose.msk.msra.mxu0 %vm172_vm0, %v31_v35 }
  0x33   :  { %905 = vmatpush.xpose.msk.msra.mxu1 %vm172_vm0, %v47_v36 }
  0x34   :  { %578 = vperm.xlu0 %929, %v508_v58  }
  0x36   :  { %874 = vmatpush.xpose.msk.msra.mxu0 %vm172_vm0, %v30_v39  ;;  %588 = vperm.xlu1 %930, %v510_v56  }
  0x37   :  { %906 = vmatpush.xpose.msk.msra.mxu1 %vm172_vm0, %v46_v40 }
  0x38   :  { %583 = vperm.xlu2 %931, %v509_v5  }
  0x3a   :  { %875 = vmatpush.xpose.msk.msra.mxu0 %vm172_vm0, %v29_v41 }
  0x3b   :  { %907 = vmatpush.xpose.msk.msra.mxu1 %vm172_vm0, %v45_v42 }
  0x3c   :  { %563 = vperm.xlu0 %929, %v505_v61  }
  0x3e   :  { %876 = vmatpush.xpose.msk.msra.mxu0 %vm172_vm0, %v28_v45  ;;  %573 = vperm.xlu1 %930, %v507_v59  }
  0x3f   :  { %908 = vmatpush.xpose.msk.msra.mxu1 %vm172_vm0, %v44_v46 }
  0x40   :  { %568 = vperm.xlu2 %931, %v506_v10  }
  0x41   :  { %877 = vmatmul.msk.f32.vlgmr.msra.gmra.mxu0 %vm172_vm0, %v60_v47 }
  0x42   :  { %909 = vmatmul.msk.f32.vlgmr.msra.gmra.mxu1 %vm172_vm0, %v60_v47 }
  0x44   :  { %548 = vperm.xlu0 %929, %v502_v0  }
  0x46   :  { %558 = vperm.xlu1 %930, %v504_v62  }
  0x48   :  { %553 = vperm.xlu2 %931, %v503_v12  }
  0x49   :  { %878 = vmatmul.msk.f32.gmra.mxu0 %vm172_vm0, %v61_v49 }
  0x4a   :  { %910 = vmatmul.msk.f32.gmra.mxu1 %vm172_vm0, %v61_v49 }
  0x4c   :  { %533 = vperm.xlu0 %929, %v499_v3  }
  0x4e   :  { %543 = vperm.xlu1 %930, %v501_v1  }
  0x50   :  { %538 = vperm.xlu2 %931, %v500_v14  }
  0x51   :  { %879 = vmatmul.msk.f32.gmra.mxu0 %vm172_vm0, %v62_v51 }
  0x52   :  { %911 = vmatmul.msk.f32.gmra.mxu1 %vm172_vm0, %v62_v51 }
  0x54   :  { %518 = vperm.xlu0 %929, %v496_v7  }
  0x56   :  { %528 = vperm.xlu1 %930, %v498_v4  }
  0x58   :  { %523 = vperm.xlu2 %931, %v497_v16  }
  0x59   :  { %880 = vmatmul.msk.f32.gmra.mxu0 %vm172_vm0, %v63_v52 }
  0x5a   :  { %912 = vmatmul.msk.f32.gmra.mxu1 %vm172_vm0, %v63_v52 }
  0x5e   :  { %513 = vperm.xlu1 %930, %v495_v8  }
  0x61   :  { %881 = vmatmul.msk.f32.gmra.mxu0 %vm172_vm0, %v64_v53 }
  0x62   :  { %913 = vmatmul.msk.f32.gmra.mxu1 %vm172_vm0, %v64_v53 }
  0x69   :  { %882 = vmatmul.msk.f32.gmra.mxu0 %vm172_vm0, %v65_v54 }
  0x6a   :  { %914 = vmatmul.msk.f32.gmra.mxu1 %vm172_vm0, %v65_v54  ;;  %v150_v45 = vpop.permute.xlu2 %149 }
  0x71   :  { %883 = vmatmul.msk.f32.gmra.mxu0 %vm172_vm0, %v66_v55 }
  0x72   :  { %915 = vmatmul.msk.f32.gmra.mxu1 %vm172_vm0, %v66_v55  ;;  %v145_v52 = vpop.permute.xlu2 %144 }
  0x76   :  { %v170_v41 = vpop.permute.xlu0 %169 }
  0x79   :  { %884 = vmatmul.msk.f32.gmra.mxu0 %vm172_vm0, %v67_v57 }
  0x7a   :  { %916 = vmatmul.msk.f32.gmra.mxu1 %vm172_vm0, %v67_v57  ;;  %v130_v1 = vpop.permute.xlu2 %129 }
  0x7e   :  { %v165_v48 = vpop.permute.xlu0 %164 }
  0x80   :  { %v160_v44 = vpop.permute.xlu1 %159 }
  0x81   :  { %885 = vmatmul.msk.f32.gmra.mxu0 %vm172_vm0, %v68_v60 }
  0x82   :  { %917 = vmatmul.msk.f32.gmra.mxu1 %vm172_vm0, %v68_v60 }
  0x86   :  { %v140_v53 = vpop.permute.xlu0 %139 }
  0x88   :  { %v155_v49 = vpop.permute.xlu1 %154 }
  0x89   :  { %886 = vmatmul.msk.f32.gmra.mxu0 %vm172_vm0, %v69_v63 }
  0x8a   :  { %918 = vmatmul.msk.f32.gmra.mxu1 %vm172_vm0, %v69_v63 }
  0x90   :  { %v135_v60 = vpop.permute.xlu1 %134 }
  0x91   :  { %887 = vmatmul.msk.f32.gmra.mxu0 %vm172_vm0, %v70_v2 }
  0x92   :  { %919 = vmatmul.msk.f32.gmra.mxu1 %vm172_vm0, %v70_v2 }
  0x99   :  { %888 = vmatmul.msk.f32.gmra.mxu0 %vm172_vm0, %v71_v6 }
  0x9a   :  { %920 = vmatmul.msk.f32.gmra.mxu1 %vm172_vm0, %v71_v6  ;;  %v125_v6 = vpop.permute.xlu0 %124 }
  0xa1   :  { %889 = vmatmul.msk.f32.gmra.mxu0 %vm172_vm0, %v72_v9 }
  0xa2   :  { %921 = vmatmul.msk.f32.gmra.mxu1 %vm172_vm0, %v72_v9 }
  0xa9   :  { %890 = vmatmul.msk.f32.gmra.mxu0 %vm172_vm0, %v73_v11 }
  0xaa   :  { %922 = vmatmul.msk.f32.gmra.mxu1 %vm172_vm0, %v73_v11 }
  0xb1   :  { %891 = vmatmul.msk.f32.gmra.mxu0 %vm172_vm0, %v74_v13 }
  0xb2   :  { %923 = vmatmul.msk.f32.gmra.mxu1 %vm172_vm0, %v74_v13 }
  0xb9   :  { %892 = vmatmul.msk.f32.gmra.mxu0 %vm172_vm0, %v75_v15 }
  0xba   :  { %924 = vmatmul.msk.f32.gmra.mxu1 %vm172_vm0, %v75_v15 }
  0xbe   :  { %v1312_v17 = vpop.f32.mrf.mxu0 }
  0xbf   :  { %v1314_v18 = vpop.f32.mrf.mxu1 }
  0xc6   :  { %v1316_v19 = vpop.f32.mrf.mxu0 }
  0xc7   :  { %v1318_v20 = vpop.f32.mrf.mxu1 }
  0xce   :  { %v1320_v21 = vpop.f32.mrf.mxu0 }
  0xcf   :  { %v1322_v22 = vpop.f32.mrf.mxu1 }
  0xd6   :  { %v1324_v23 = vpop.f32.mrf.mxu0 }
  0xd7   :  { %v1326_v24 = vpop.f32.mrf.mxu1 }
  0xde   :  { %v1328_v25 = vpop.f32.mrf.mxu0 }
  0xdf   :  { %v1330_v26 = vpop.f32.mrf.mxu1 }
  0xe6   :  { %v1332_v27 = vpop.f32.mrf.mxu0 }
  0xe7   :  { %v1334_v28 = vpop.f32.mrf.mxu1 }
  0xee   :  { %v1336_v29 = vpop.f32.mrf.mxu0 }
  0xef   :  { %v1338_v30 = vpop.f32.mrf.mxu1 }
  0xf6   :  { %v1340_v31 = vpop.f32.mrf.mxu0 }
  0xf7   :  { %v1342_v32 = vpop.f32.mrf.mxu1 }
  0xfe   :  { %v358_v33 = vpop.f32.mrf.mxu0 }
  0xff   :  { %v423_v34 = vpop.f32.mrf.mxu1 }
 0x106   :  { %v361_v35 = vpop.f32.mrf.mxu0 }
 0x107   :  { %v426_v36 = vpop.f32.mrf.mxu1  ;;  %v362_v15 = vadd.f32 %v361_v35, %v140_v53  ;;  %v110_v35 = vpop.permute.xlu0 %109 }
 0x108   :  { %v427_v16 = vadd.f32 %v426_v36, %v140_v53  ;;  %v353_v36 = vadd.f32 %v1336_v29, %v125_v6 }
 0x10e   :  { %v364_v37 = vpop.f32.mrf.mxu0 }
 0x10f   :  { %v429_v38 = vpop.f32.mrf.mxu1  ;;  %v365_v11 = vadd.f32 %v364_v37, %v145_v52  ;;  %v356_v37 = vadd.f32 %v1340_v31, %v130_v1 }
 0x110   :  { %v430_v12 = vadd.f32 %v429_v38, %v145_v52  ;;  %v421_v38 = vadd.f32 %v1342_v32, %v130_v1 }
 0x111   :  { %v461_v31 = vmax.f32 %v356_v37, 0.0 }
 0x112   :  { %v462_v52 = vmax.f32 %v421_v38, 0.0 }
 0x116   :  { %v367_v39 = vpop.f32.mrf.mxu0 }
 0x117   :  { %v432_v40 = vpop.f32.mrf.mxu1  ;;  %v368_v7 = vadd.f32 %v367_v39, %v150_v45  ;;  %v424_v39 = vadd.f32 %v423_v34, %v135_v60 }
 0x118   :  { %v433_v8 = vadd.f32 %v432_v40, %v150_v45  ;;  %v467_v40 = vmax.f32 %v365_v11, 0.0  ;;  %v468_v45 = vmax.f32 %v430_v12, 0.0  ;;  %v489_v11 = vld [vmem:[%s1468_s3 + $0x50] sm:$0xff]  ;;  %v490_v12 = vld [vmem:[%s1468_s3 + $0x58] sm:$0xff] }
 0x119   :  { %v464_v34 = vmax.f32 %v424_v39, 0.0 }
 0x11e   :  { %v370_v42 = vpop.f32.mrf.mxu0 }
 0x11f   :  { %v435_v43 = vpop.f32.mrf.mxu1  ;;  %v371_v2 = vadd.f32 %v370_v42, %v155_v49  ;;  %v470_v42 = vmax.f32 %v433_v8, 0.0  ;;  %v486_v8 = vld [vmem:[%s1468_s3 + $0x38] sm:$0xff] }
 0x120   :  { %v436_v3 = vadd.f32 %v435_v43, %v155_v49  ;;  %v120_v43 = vpop.permute.xlu1 %119  ;;  %v418_v49 = vadd.f32 %v1338_v30, %v125_v6  ;;  %v484_v6 = vld [vmem:[%s1468_s3 + $0x28] sm:$0xff] }
 0x121   :  { %v471_v13 = vmax.f32 %v371_v2, 0.0 }
 0x122   :  { %v472_v14 = vmax.f32 %v436_v3, 0.0  ;;  %v460_v29 = vmax.f32 %v418_v49, 0.0 }
 0x126   :  { %v373_v46 = vpop.f32.mrf.mxu0 }
 0x127   :  { %v438_v47 = vpop.f32.mrf.mxu1  ;;  %v374_v61 = vadd.f32 %v373_v46, %v160_v44  ;;  %v115_v46 = vpop.permute.xlu2 %114 }
 0x128   :  { %v439_v62 = vadd.f32 %v438_v47, %v160_v44  ;;  %v359_v44 = vadd.f32 %v358_v33, %v135_v60  ;;  %v465_v47 = vmax.f32 %v362_v15, 0.0  ;;  %v347_v32 = vadd.f32 %v1328_v25, %v115_v46  ;;  %v105_v30 = vpop.permute.xlu1 %104  ;;  %v95_v60 = vpop.permute.xlu0 %94  ;;  %v493_v15 = vld [vmem:[%s1468_s3 + $0x70] sm:$0xff] }
 0x129   :  { %v473_v9 = vmax.f32 %v374_v61, 0.0  ;;  %v412_v53 = vadd.f32 %v1330_v26, %v115_v46  ;;  %v406_v25 = vadd.f32 %v1322_v22, %v105_v30 }
 0x12a   :  { %v474_v10 = vmax.f32 %v439_v62, 0.0  ;;  %v463_v33 = vmax.f32 %v359_v44, 0.0 }
 0x12b   :  { %v456_v26 = vmax.f32 %v412_v53, 0.0  ;;  %v452_v1 = vmax.f32 %v406_v25, 0.0 }
 0x12e   :  { %v376_v50 = vpop.f32.mrf.mxu0 }
 0x12f   :  { %v441_v51 = vpop.f32.mrf.mxu1  ;;  %v377_v56 = vadd.f32 %v376_v50, %v165_v48  ;;  %v350_v50 = vadd.f32 %v1332_v27, %v120_v43 }
 0x130   :  { %v442_v57 = vadd.f32 %v441_v51, %v165_v48  ;;  %v466_v48 = vmax.f32 %v427_v16, 0.0  ;;  %v415_v51 = vadd.f32 %v1334_v28, %v120_v43  ;;  %v100_v28 = vpop.permute.xlu2 %99  ;;  %v494_v16 = vld [vmem:[%s1468_s3 + $0x78] sm:$0xff] }
 0x131   :  { %v475_v4 = vmax.f32 %v377_v56, 0.0  ;;  %v409_v56 = vadd.f32 %v1326_v24, %v110_v35  ;;  %v457_v27 = vmax.f32 %v350_v50, 0.0  ;;  %v338_v61 = vadd.f32 %v1316_v19, %v100_v28 }
 0x132   :  { %v476_v5 = vmax.f32 %v442_v57, 0.0  ;;  %v458_v57 = vmax.f32 %v415_v51, 0.0 }
 0x133   :  { %v454_v24 = vmax.f32 %v409_v56, 0.0  ;;  %v449_v22 = vmax.f32 %v338_v61, 0.0 }
 0x136   :  { %v379_v54 = vpop.f32.mrf.mxu0 }
 0x137   :  { %v444_v55 = vpop.f32.mrf.mxu1  ;;  %v380_v58 = vadd.f32 %v379_v54, %v170_v41  ;;  %v459_v54 = vmax.f32 %v353_v36, 0.0 }
 0x138   :  { %v445_v59 = vadd.f32 %v444_v55, %v170_v41  ;;  %v469_v41 = vmax.f32 %v368_v7, 0.0  ;;  %v344_v55 = vadd.f32 %v1324_v23, %v110_v35  ;;  %v403_v23 = vadd.f32 %v1318_v20, %v100_v28  ;;  %v479_v20 = vld [vmem:[%s1468_s3] sm:$0xff]  ;;  %v485_v7 = vld [vmem:[%s1468_s3 + $0x30] sm:$0xff]  ;;  %v584_v56 = vpop.permute.xlu2 %583  ;;  %v579_v28 = vpop.permute.xlu0 %578 }
 0x139   :  { %v477_v63 = vmax.f32 %v380_v58, 0.0  ;;  %v341_v58 = vadd.f32 %v1320_v21, %v105_v30 }
 0x13a   :  { %v478_v0 = vmax.f32 %v445_v59, 0.0  ;;  %v455_v59 = vmax.f32 %v347_v32, 0.0  ;;  %v453_v62 = vmax.f32 %v344_v55, 0.0  ;;  %v450_v2 = vmax.f32 %v403_v23, 0.0  ;;  %v589_v55 = vpop.permute.xlu1 %588 }
 0x13b   :  { %591 = vmatpush.msra.mxu2 %v477_v63  ;;  %v335_v63 = vadd.f32 %v1312_v17, %v95_v60  ;;  %v451_v21 = vmax.f32 %v341_v58, 0.0  ;;  %v480_v17 = vld [vmem:[%s1468_s3 + $0x8] sm:$0xff] }
 0x13c   :  { %656 = vmatpush.msra.mxu3 %v478_v0  ;;  %v400_v0 = vadd.f32 %v1314_v18, %v95_v60  ;;  %v481_v18 = vld [vmem:[%s1468_s3 + $0x10] sm:$0xff] }
 0x13d   :  { %592 = vmatpush.msra.mxu2 %v475_v4  ;;  %v447_v3 = vmax.f32 %v335_v63, 0.0  ;;  %v482_v4 = vld [vmem:[%s1468_s3 + $0x18] sm:$0xff] }
 0x13e   :  { %657 = vmatpush.msra.mxu3 %v476_v5  ;;  %v448_v19 = vmax.f32 %v400_v0, 0.0  ;;  %v483_v5 = vld [vmem:[%s1468_s3 + $0x20] sm:$0xff] }
 0x13f   :  { %593 = vmatpush.msra.mxu2 %v473_v9  ;;  %v487_v9 = vld [vmem:[%s1468_s3 + $0x40] sm:$0xff] }
 0x140   :  { %658 = vmatpush.msra.mxu3 %v474_v10  ;;  %v488_v10 = vld [vmem:[%s1468_s3 + $0x48] sm:$0xff]  ;;  %v564_v60 = vpop.permute.xlu0 %563 }
 0x141   :  { %594 = vmatpush.msra.mxu2 %v471_v13  ;;  %v491_v13 = vld [vmem:[%s1468_s3 + $0x60] sm:$0xff] }
 0x142   :  { %659 = vmatpush.msra.mxu3 %v472_v14  ;;  %v492_v14 = vld [vmem:[%s1468_s3 + $0x68] sm:$0xff]  ;;  %v574_v58 = vpop.permute.xlu1 %573 }
 0x143   :  { %595 = vmatpush.msra.mxu2 %v469_v41 }
 0x144   :  { %660 = vmatpush.msra.mxu3 %v470_v42 }
 0x145   :  { %596 = vmatpush.msra.mxu2 %v467_v40 }
 0x146   :  { %661 = vmatpush.msra.mxu3 %v468_v45 }
 0x147   :  { %597 = vmatpush.msra.mxu2 %v465_v47 }
 0x148   :  { %662 = vmatpush.msra.mxu3 %v466_v48 }
 0x149   :  { %598 = vmatpush.msra.mxu2 %v463_v33 }
 0x14a   :  { %663 = vmatpush.msra.mxu3 %v464_v34  ;;  %v559_v61 = vpop.permute.xlu1 %558 }
 0x14b   :  { %599 = vmatpush.msra.mxu2 %v461_v31 }
 0x14c   :  { %664 = vmatpush.msra.mxu3 %v462_v52 }
 0x14d   :  { %600 = vmatpush.msra.mxu2 %v459_v54 }
 0x14e   :  { %665 = vmatpush.msra.mxu3 %v460_v29 }
 0x14f   :  { %601 = vmatpush.msra.mxu2 %v457_v27 }
 0x150   :  { %666 = vmatpush.msra.mxu3 %v458_v57 }
 0x151   :  { %602 = vmatpush.msra.mxu2 %v455_v59 }
 0x152   :  { %667 = vmatpush.msra.mxu3 %v456_v26  ;;  %v569_v26 = vpop.permute.xlu2 %568 }
 0x153   :  { %603 = vmatpush.msra.mxu2 %v453_v62 }
 0x154   :  { %668 = vmatpush.msra.mxu3 %v454_v24 }
 0x155   :  { %604 = vmatpush.msra.mxu2 %v451_v21 }
 0x156   :  { %669 = vmatpush.msra.mxu3 %v452_v1 }
 0x157   :  { %605 = vmatpush.msra.mxu2 %v449_v22 }
 0x158   :  { %670 = vmatpush.msra.mxu3 %v450_v2 }
 0x159   :  { %606 = vmatpush.msra.mxu2 %v447_v3 }
 0x15a   :  { %671 = vmatpush.msra.mxu3 %v448_v19  ;;  %607 = vmatmul.f32.vlgmr.msra.gmra.mxu2 %v479_v20  ;;  %v554_v19 = vpop.permute.xlu2 %553 }
 0x15b   :  { %672 = vmatmul.f32.vlgmr.msra.gmra.mxu3 %v479_v20 }
 0x162   :  { %610 = vmatmul.f32.gmra.mxu2 %v480_v17 }
 0x163   :  { %675 = vmatmul.f32.gmra.mxu3 %v480_v17 }
 0x16a   :  { %613 = vmatmul.f32.gmra.mxu2 %v481_v18 }
 0x16b   :  { %678 = vmatmul.f32.gmra.mxu3 %v481_v18 }
 0x172   :  { %616 = vmatmul.f32.gmra.mxu2 %v482_v4 }
 0x173   :  { %681 = vmatmul.f32.gmra.mxu3 %v482_v4 }
 0x17a   :  { %619 = vmatmul.f32.gmra.mxu2 %v483_v5 }
 0x17b   :  { %684 = vmatmul.f32.gmra.mxu3 %v483_v5  ;;  %v549_v5 = vpop.permute.xlu0 %548 }
 0x182   :  { %622 = vmatmul.f32.gmra.mxu2 %v484_v6 }
 0x183   :  { %687 = vmatmul.f32.gmra.mxu3 %v484_v6 }
 0x18a   :  { %625 = vmatmul.f32.gmra.mxu2 %v485_v7 }
 0x18b   :  { %690 = vmatmul.f32.gmra.mxu3 %v485_v7 }
 0x192   :  { %628 = vmatmul.f32.gmra.mxu2 %v486_v8 }
 0x193   :  { %693 = vmatmul.f32.gmra.mxu3 %v486_v8 }
 0x19a   :  { %631 = vmatmul.f32.gmra.mxu2 %v487_v9 }
 0x19b   :  { %696 = vmatmul.f32.gmra.mxu3 %v487_v9 }
 0x1a2   :  { %634 = vmatmul.f32.gmra.mxu2 %v488_v10 }
 0x1a3   :  { %699 = vmatmul.f32.gmra.mxu3 %v488_v10  ;;  %v544_v10 = vpop.permute.xlu1 %543 }
 0x1aa   :  { %637 = vmatmul.f32.gmra.mxu2 %v489_v11 }
 0x1ab   :  { %702 = vmatmul.f32.gmra.mxu3 %v489_v11 }
 0x1b2   :  { %640 = vmatmul.f32.gmra.mxu2 %v490_v12 }
 0x1b3   :  { %705 = vmatmul.f32.gmra.mxu3 %v490_v12 }
 0x1ba   :  { %643 = vmatmul.f32.gmra.mxu2 %v491_v13 }
 0x1bb   :  { %708 = vmatmul.f32.gmra.mxu3 %v491_v13 }
 0x1c2   :  { %646 = vmatmul.f32.gmra.mxu2 %v492_v14 }
 0x1c3   :  { %711 = vmatmul.f32.gmra.mxu3 %v492_v14 }
 0x1ca   :  { %649 = vmatmul.f32.gmra.mxu2 %v493_v15 }
 0x1cb   :  { %714 = vmatmul.f32.gmra.mxu3 %v493_v15 }
 0x1d2   :  { %652 = vmatmul.f32.gmra.mxu2 %v494_v16 }
 0x1d3   :  { %717 = vmatmul.f32.gmra.mxu3 %v494_v16 }
 0x1dd   :  { %v1408_v41 = vpop.f32.mrf.mxu2 }
 0x1de   :  { %v1410_v42 = vpop.f32.mrf.mxu3 }
 0x1e5   :  { %v1412_v43 = vpop.f32.mrf.mxu2 }
 0x1e6   :  { %v1414_v44 = vpop.f32.mrf.mxu3 }
 0x1ed   :  { %v1416_v39 = vpop.f32.mrf.mxu2 }
 0x1ee   :  { %v1418_v40 = vpop.f32.mrf.mxu3 }
 0x1f5   :  { %v1420_v45 = vpop.f32.mrf.mxu2 }
 0x1f6   :  { %v1422_v46 = vpop.f32.mrf.mxu3 }
 0x1fd   :  { %v1424_v37 = vpop.f32.mrf.mxu2 }
 0x1fe   :  { %v1426_v38 = vpop.f32.mrf.mxu3 }
 0x205   :  { %v1428_v47 = vpop.f32.mrf.mxu2 }
 0x206   :  { %v1430_v48 = vpop.f32.mrf.mxu3 }
 0x20d   :  { %v1432_v35 = vpop.f32.mrf.mxu2 }
 0x20e   :  { %v1434_v36 = vpop.f32.mrf.mxu3 }
 0x215   :  { %v1436_v49 = vpop.f32.mrf.mxu2 }
 0x216   :  { %v1438_v33 = vpop.f32.mrf.mxu3 }
 0x21d   :  { %v632_v34 = vpop.f32.mrf.mxu2 }
 0x21e   :  { %v697_v50 = vpop.f32.mrf.mxu3 }
 0x225   :  { %v635_v51 = vpop.f32.mrf.mxu2 }
 0x226   :  { %v700_v31 = vpop.f32.mrf.mxu3  ;;  %v636_v15 = vadd.f32 %v635_v51, %v559_v61  ;;  %v534_v51 = vpop.permute.xlu0 %533 }
 0x227   :  { %v701_v16 = vadd.f32 %v700_v31, %v559_v61  ;;  %v627_v31 = vadd.f32 %v1432_v35, %v544_v10  ;;  %v686_v61 = vadd.f32 %v1426_v38, %v534_v51 }
 0x229   :  { %v733_v35 = vmax.f32 %v627_v31, 0.0 }
 0x22d   :  { %v638_v52 = vpop.f32.mrf.mxu2 }
 0x22e   :  { %v703_v32 = vpop.f32.mrf.mxu3  ;;  %v639_v11 = vadd.f32 %v638_v52, %v564_v60  ;;  %v630_v52 = vadd.f32 %v1436_v49, %v549_v5  ;;  %v519_v38 = vpop.permute.xlu0 %518 }
 0x22f   :  { %v704_v12 = vadd.f32 %v703_v32, %v564_v60  ;;  %v695_v32 = vadd.f32 %v1438_v33, %v549_v5  ;;  %v621_v60 = vadd.f32 %v1424_v37, %v534_v51 }
 0x231   :  { %v736_v33 = vmax.f32 %v695_v32, 0.0  ;;  %v729_v37 = vmax.f32 %v621_v60, 0.0 }
 0x235   :  { %v641_v53 = vpop.f32.mrf.mxu2 }
 0x236   :  { %v706_v54 = vpop.f32.mrf.mxu3  ;;  %v642_v6 = vadd.f32 %v641_v53, %v569_v26  ;;  %v698_v53 = vadd.f32 %v697_v50, %v554_v19 }
 0x237   :  { %v707_v7 = vadd.f32 %v706_v54, %v569_v26  ;;  %v741_v54 = vmax.f32 %v639_v11, 0.0  ;;  %v735_v26 = vmax.f32 %v630_v52, 0.0 }
 0x238   :  { %v738_v50 = vmax.f32 %v698_v53, 0.0 }
 0x23d   :  { %v644_v29 = vpop.f32.mrf.mxu2 }
 0x23e   :  { %v709_v30 = vpop.f32.mrf.mxu3  ;;  %v645_v20 = vadd.f32 %v644_v29, %v574_v58  ;;  %v743_v29 = vmax.f32 %v642_v6, 0.0 }
 0x23f   :  { %v710_v17 = vadd.f32 %v709_v30, %v574_v58  ;;  %v744_v30 = vmax.f32 %v707_v7, 0.0  ;;  %v692_v58 = vadd.f32 %v1434_v36, %v544_v10 }
 0x240   :  { %v745_v13 = vmax.f32 %v645_v20, 0.0 }
 0x241   :  { %v746_v14 = vmax.f32 %v710_v17, 0.0 }
 0x245   :  { %v647_v27 = vpop.f32.mrf.mxu2 }
 0x246   :  { %v712_v57 = vpop.f32.mrf.mxu3  ;;  %v648_v1 = vadd.f32 %v647_v27, %v579_v28  ;;  %v539_v27 = vpop.permute.xlu2 %538 }
 0x247   :  { %v713_v22 = vadd.f32 %v712_v57, %v579_v28  ;;  %v739_v57 = vmax.f32 %v636_v15, 0.0  ;;  %v740_v28 = vmax.f32 %v701_v16, 0.0  ;;  %v689_v49 = vadd.f32 %v1430_v48, %v539_v27 }
 0x248   :  { %v747_v8 = vmax.f32 %v648_v1, 0.0  ;;  %v612_v1 = vadd.f32 %v1412_v43, %v519_v38 }
 0x249   :  { %v748_v9 = vmax.f32 %v713_v22, 0.0 }
 0x24a   :  { %v723_v20 = vmax.f32 %v612_v1, 0.0 }
 0x24d   :  { %v650_v25 = vpop.f32.mrf.mxu2 }
 0x24e   :  { %v715_v59 = vpop.f32.mrf.mxu3  ;;  %v651_v24 = vadd.f32 %v650_v25, %v584_v56  ;;  %v529_v25 = vpop.permute.xlu1 %528 }
 0x24f   :  { %v716_v63 = vadd.f32 %v715_v59, %v584_v56  ;;  %v742_v56 = vmax.f32 %v704_v12, 0.0  ;;  %v624_v59 = vadd.f32 %v1428_v47, %v539_v27  ;;  %v618_v36 = vadd.f32 %v1420_v45, %v529_v25  ;;  %v524_v48 = vpop.permute.xlu2 %523 }
 0x250   :  { %v749_v18 = vmax.f32 %v651_v24, 0.0  ;;  %v732_v47 = vmax.f32 %v689_v49, 0.0  ;;  %v677_v45 = vadd.f32 %v1414_v44, %v519_v38  ;;  %v753_v44 = vld [vmem:[%s1470_s5] sm:$0x1]  ;;  %s967_s5 = smov [#allocation3]  }
 0x251   :  { %v750_v4 = vmax.f32 %v716_v63, 0.0  ;;  %v731_v24 = vmax.f32 %v624_v59, 0.0  ;;  %v615_v63 = vadd.f32 %v1416_v39, %v524_v48  ;;  %v727_v22 = vmax.f32 %v618_v36, 0.0 }
 0x252   :  { %v724_v17 = vmax.f32 %v677_v45, 0.0 }
 0x255   :  { %v653_v23 = vpop.f32.mrf.mxu2 }
 0x256   :  { %v718_v62 = vpop.f32.mrf.mxu3  ;;  %v654_v0 = vadd.f32 %v653_v23, %v589_v55  ;;  %v734_v23 = vmax.f32 %v692_v58, 0.0 }
 0x257   :  { %v719_v21 = vadd.f32 %v718_v62, %v589_v55  ;;  %v633_v55 = vadd.f32 %v632_v34, %v554_v19  ;;  %v683_v62 = vadd.f32 %v1422_v46, %v529_v25  ;;  %v725_v19 = vmax.f32 %v615_v63, 0.0 }
 0x258   :  { %v751_v2 = vmax.f32 %v654_v0, 0.0  ;;  %v680_v0 = vadd.f32 %v1418_v40, %v524_v48 }
 0x259   :  { %v752_v3 = vmax.f32 %v719_v21, 0.0  ;;  %v737_v34 = vmax.f32 %v633_v55, 0.0  ;;  %v730_v21 = vmax.f32 %v686_v61, 0.0  ;;  %v728_v46 = vmax.f32 %v683_v62, 0.0 }
 0x25a   :  { %756 = vmatpush.msrb.mxu2 %v751_v2  ;;  %v514_v2 = vpop.permute.xlu1 %513  ;;  %v726_v40 = vmax.f32 %v680_v0, 0.0 }
 0x25b   :  { %776 = vmatpush.msrb.mxu3 %v752_v3  ;;  %v609_v3 = vadd.f32 %v1408_v41, %v514_v2  ;;  %v674_v39 = vadd.f32 %v1410_v42, %v514_v2  ;;  %v755_v41 = vstv %s1471_s6  ;;  %s850_s6 = sshll.u32 %s967_s5, 4  ;;  %s851_s6 = int_to_ptr.vmem [resolvable:$true] %s850_s6 }
 0x25c   :  { %757 = vmatpush.msrb.mxu2 %v749_v18 }
 0x25d   :  { %777 = vmatpush.msrb.mxu3 %v750_v4  ;;  %v721_v43 = vmax.f32 %v609_v3, 0.0  ;;  %v722_v18 = vmax.f32 %v674_v39, 0.0 }
 0x25e   :  { %758 = vmatpush.msrb.mxu2 %v747_v8 }
 0x25f   :  { %778 = vmatpush.msrb.mxu3 %v748_v9 }
 0x260   :  { %759 = vmatpush.msrb.mxu2 %v745_v13 }
 0x261   :  { %779 = vmatpush.msrb.mxu3 %v746_v14 }
 0x262   :  { %760 = vmatpush.msrb.mxu2 %v743_v29 }
 0x263   :  { %780 = vmatpush.msrb.mxu3 %v744_v30 }
 0x264   :  { %761 = vmatpush.msrb.mxu2 %v741_v54 }
 0x265   :  { %781 = vmatpush.msrb.mxu3 %v742_v56 }
 0x266   :  { %762 = vmatpush.msrb.mxu2 %v739_v57  ;;  %v840_v57 = vlaneseq }
 0x267   :  { %782 = vmatpush.msrb.mxu3 %v740_v28 }
 0x268   :  { %763 = vmatpush.msrb.mxu2 %v737_v34  ;;  %vm842_vm10 = vcmp.lt.s32.totalorder %v840_v57, 256 }
 0x269   :  { %783 = vmatpush.msrb.mxu3 %v738_v50 }
 0x26a   :  { %764 = vmatpush.msrb.mxu2 %v735_v26 }
 0x26b   :  { %784 = vmatpush.msrb.mxu3 %v736_v33 }
 0x26c   :  { %765 = vmatpush.msrb.mxu2 %v733_v35 }
 0x26d   :  { %785 = vmatpush.msrb.mxu3 %v734_v23 }
 0x26e   :  { %766 = vmatpush.msrb.mxu2 %v731_v24 }
 0x26f   :  { %786 = vmatpush.msrb.mxu3 %v732_v47 }
 0x270   :  { %767 = vmatpush.msrb.mxu2 %v729_v37 }
 0x271   :  { %787 = vmatpush.msrb.mxu3 %v730_v21 }
 0x272   :  { %768 = vmatpush.msrb.mxu2 %v727_v22 }
 0x273   :  { %788 = vmatpush.msrb.mxu3 %v728_v46 }
 0x274   :  { %769 = vmatpush.msrb.mxu2 %v725_v19 }
 0x275   :  { %789 = vmatpush.msrb.mxu3 %v726_v40 }
 0x276   :  { %770 = vmatpush.msrb.mxu2 %v723_v20 }
 0x277   :  { %790 = vmatpush.msrb.mxu3 %v724_v17 }
 0x278   :  { %771 = vmatpush.msrb.mxu2 %v721_v43 }
 0x279   :  { %791 = vmatpush.msrb.mxu3 %v722_v18  ;;  %772 = vmatmul.f32.vlgmr.msrb.gmra.mxu2 %v753_v44 }
 0x27a   :  { %792 = vmatmul.f32.vlgmr.msrb.gmra.mxu3 %v753_v44 }
 0x2fc   :  { %v773_v4 = vpop.f32.mrf.mxu2 }
 0x2fd   :  { %v793_v42 = vpop.f32.mrf.mxu3  ;;  %v774_v6 = vadd.f32 %v773_v4, %v755_v41 }
 0x2fe   :  { %v794_v5 = vadd.f32 %v793_v42, %v755_v41 }
 0x2ff   :  { %v925_v8 = vmul.f32 -1.442695, %v774_v6 }
 0x300   :  { %v926_v7 = vmul.f32 -1.442695, %v794_v5 }
 0x302   :  { %932 = vpow2.f32 %v926_v7 }
 0x303   :  { %934 = vpow2.f32 %v925_v8 }
 0x308   :  { %v933_v9 = vpop.eup %932 }
 0x309   :  { %v935_v10 = vpop.eup %934  ;;  %v803_v11 = vadd.f32 1.0, %v933_v9 }
 0x30a   :  { %v802_v12 = vadd.f32 1.0, %v935_v10 }
 0x30b   :  { %936 = vrcp.f32 %v803_v11  ;;  %v830_v55 = vand.u32 2147483648, %v803_v11  ;;  %v828_v54 = vand.u32 2147483647, %v803_v11  ;;  %vm824_vm3 = vweird.f32 %v803_v11 }
 0x30c   :  { %938 = vrcp.f32 %v802_v12  ;;  %v815_v27 = vand.u32 2147483648, %v802_v12  ;;  %v813_v52 = vand.u32 2147483647, %v802_v12  ;;  %vm809_vm4 = vweird.f32 %v802_v12 }
 0x30d   :  { %v831_v51 = vor.u32 1.1754944e-38, %v830_v55  ;;  %vm829_vm7 = vcmp.eq.f32.partialorder %v828_v54, 8.507059e+37 }
 0x30e   :  { %v816_v34 = vor.u32 1.1754944e-38, %v815_v27  ;;  %vm814_vm9 = vcmp.eq.f32.partialorder %v813_v52, 8.507059e+37 }
 0x311   :  { %v937_v13 = vpop.eup %936 }
 0x312   :  { %v939_v14 = vpop.eup %938  ;;  %v820_v15 = vmul.f32 %v937_v13, %v803_v11  ;;  %vm825_vm1 = vweird.f32 %v937_v13 }
 0x313   :  { %v805_v16 = vmul.f32 %v939_v14, %v802_v12  ;;  %vm810_vm2 = vweird.f32 %v939_v14  ;;  %vm826_vm5 = vmor %vm824_vm3, %vm825_vm1 }
 0x314   :  { %v821_v29 = vsub.f32 1.0, %v820_v15  ;;  %vm811_vm6 = vmor %vm809_vm4, %vm810_vm2 }
 0x315   :  { %v806_v30 = vsub.f32 1.0, %v805_v16 }
 0x316   :  { %v822_v53 = vmul.f32 %v937_v13, %v821_v29 }
 0x317   :  { %v807_v56 = vmul.f32 %v939_v14, %v806_v30 }
 0x318   :  { %v823_v32 = vadd.f32 %v937_v13, %v822_v53 }
 0x319   :  { %v808_v28 = vadd.f32 %v939_v14, %v807_v56 }
 0x31a   :  { %v827_v31 = vsel %vm826_vm5, %v937_v13, %v823_v32 }
 0x31b   :  { %v812_v58 = vsel %vm811_vm6, %v939_v14, %v808_v28  ;;  %v832_v50 = vsel %vm829_vm7, %v831_v51, %v827_v31 }
 0x31c   :  { %v836_v25 = vrot.slane %v832_v50, 7  ;;  %v817_v59 = vsel %vm814_vm9, %v816_v34, %v812_v58 }
 0x31e   :  { %v838_v49 = vsel %vm837_vm8, %v817_v59, %v836_v25 }
 0x31f   :  { %844 = vst.msk [vmem:[#allocation3] sm:$0x3] %vm842_vm10, %v838_v49 }
 0x320   :  { %855 = dma.vmem_to_hbm [thread:$0]  %s851_s6, 32, %s853_s25, [#allocation4]  }
 0x321   :  { %964 = dma.done.wait [#allocation4], 32  }
 0x322   :  { %965 = vsyncadd [#allocation4], 4294967264 }
 0x323   :  { %860 = vsyncpa [#allocation4], 1 }

</bundles_post_ra>
